<compile_context>
chip_gen: v6e
topology: v6e:2x2x1
jax: 0.10.0
libtpu: 0.0.40
codegen_flags: <defaults>
</compile_context>

<pallas_src>
import functools

import jax
import jax.numpy as jnp
from jax import lax
from jax.experimental import pallas as pl
from jax.experimental.pallas import tpu as pltpu

CLS_ID = 101  # BERT '[CLS]'
SEP_ID = 102  # BERT '[SEP]'
PAD_ID = 0    # BERT '[PAD]'

LANES = 128


def _round_up(x, m):
    return ((x + m - 1) // m) * m


def _next_pow2(x):
    return 1 << (x - 1).bit_length()


# ----------------------------------------------------------------------------
# Pallas kernel: pack raw token ids into (input_ids, input_mask), lane-dense
# ----------------------------------------------------------------------------
def caption_pack_kernel(tok_ref, eff_ref, ids_ref, mask_ref, *, slot_len):
    # tok_ref  : [TB, lanes] int32 raw token ids; caption c's token j sits at
    #            lane c*slot_len + j, zero-padded.
    # eff_ref  : [TB, lanes] int32 per-element truncated caption length
    #            (min(len, L-2)), pre-broadcast across each caption's slot.
    # ids_ref / mask_ref : [TB, lanes] int32 outputs (lanes % 128 == 0).
    TB, lanes = ids_ref.shape
    lane = lax.broadcasted_iota(jnp.int32, (TB, lanes), 1)
    if slot_len & (slot_len - 1) == 0:
        pos = lane & jnp.int32(slot_len - 1)      # lane % slot_len (pow2 slot)
    else:
        pos = lane % jnp.int32(slot_len)

    eff = eff_ref[...]
    toks = tok_ref[...]
    # Output position p >= 1 holds raw token p-1: one XLU lane-rotate of the
    # whole 128-lane row.  Each slot's wrap-in value at position 0 is
    # overwritten by [CLS], so cross-slot bleed is harmless.
    shifted = pltpu.roll(toks, shift=1, axis=1)

    is_cls = pos == 0
    is_tok = (pos >= 1) & (pos <= eff)
    is_sep = pos == eff + 1

    # One select + additive disjoint boundary masks (instead of 3-deep where).
    ids = jnp.where(is_tok, shifted, jnp.int32(PAD_ID))
    ids = (ids
           + is_cls.astype(jnp.int32) * jnp.int32(CLS_ID)
           + is_sep.astype(jnp.int32) * jnp.int32(SEP_ID))

    ids_ref[...] = ids
    mask_ref[...] = (pos < eff + 2).astype(jnp.int32)


def lxrt_encoder_caption_pack(token_ids, lengths):
    """token_ids: [B, L] int32 raw ids (zero padded), lengths: [B] int32.

    Returns (cap_input_ids, cap_segment_ids, cap_input_mask), each [B, L] int32,
    matching the PyTorch module's return order.
    """
    B, L = token_ids.shape

    # Caption slot width / lane packing so the kernel's last dim is 128-dense.
    if L <= LANES:
        slot = _next_pow2(L)              # power of two -> divides 128
        lanes = LANES
    else:
        slot = _round_up(L, LANES)
        lanes = slot
    cpl = lanes // slot                   # captions per 128-lane row

    RB = -(-B // cpl)                     # packed rows needed
    if RB <= 8:
        TB = RB                           # full-array block (tiling exception)
    else:
        TB = min(128, _round_up(RB, 8))   # 128*128*4B = 64 KiB per buffer;
                                          # fits v7x's 32 MiB scoped VMEM easily
    RB_pad = _round_up(RB, TB)
    B_pad = RB_pad * cpl

    token_ids = token_ids.astype(jnp.int32)
    tok = jnp.zeros((B_pad, slot), jnp.int32).at[:B, :L].set(token_ids)
    eff = jnp.minimum(lengths.astype(jnp.int32), jnp.int32(L - 2))
    eff = jnp.zeros((B_pad,), jnp.int32).at[:B].set(eff)
    eff = jnp.broadcast_to(eff[:, None], (B_pad, slot))

    tok_packed = tok.reshape(RB_pad, lanes)
    eff_packed = eff.reshape(RB_pad, lanes)

    kernel = functools.partial(caption_pack_kernel, slot_len=slot)
    spec = pl.BlockSpec((TB, lanes), lambda b: (b, 0))

    ids_p, mask_p = pl.pallas_call(
        kernel,
        out_shape=(jax.ShapeDtypeStruct((RB_pad, lanes), jnp.int32),
                   jax.ShapeDtypeStruct((RB_pad, lanes), jnp.int32)),
        grid=(RB_pad // TB,),
        in_specs=[spec, spec],
        out_specs=(spec, spec),
        compiler_params=pltpu.CompilerParams(
            dimension_semantics=("parallel",)),
    )(tok_packed, eff_packed)

    ids = ids_p.reshape(B_pad, slot)[:B, :L]
    mask = mask_p.reshape(B_pad, slot)[:B, :L]
    seg = jnp.zeros((B, L), jnp.int32)    # segment ids are constant zero
    return ids, seg, mask


# ----------------------------------------------------------------------------
# Host-side glue: deterministic toy wordpiece "tokenizer"
# ----------------------------------------------------------------------------
# TODO(synk): real BertTokenizer (wordpiece over a 30k vocab) is host-side
# string processing with no Pallas equivalent; a deterministic hash tokenizer
# stands in for it here.
def toy_tokenize(sentence, vocab_size=1000, offset=1000):
    words = sentence.strip().lower().split()
    return [offset + (sum(ord(c) * (i + 1) for i, c in enumerate(w)) % vocab_size)
            for w in words]


def build_inputs(captions, max_seq_length):
    L = max_seq_length
    tok = [toy_tokenize(c) for c in captions]
    lens = [min(len(t), L) for t in tok]
    mat = [t[:L] + [0] * (L - min(len(t), L)) for t in tok]
    return (jnp.array(mat, dtype=jnp.int32), jnp.array(lens, dtype=jnp.int32))


def reference_pack(token_ids, lengths, L):
    """Pure-Python reference mirroring convert_sents_to_features_cap."""
    ids_out, seg_out, mask_out = [], [], []
    for row, n in zip(jax.device_get(token_ids).tolist(),
                      jax.device_get(lengths).tolist()):
        toks = row[: min(n, L - 2)]
        ids = [CLS_ID] + toks + [SEP_ID]
        mask = [1] * len(ids)
        seg = [0] * len(ids)
        pad = [0] * (L - len(ids))
        ids_out.append(ids + pad)
        mask_out.append(mask + pad)
        seg_out.append(seg + pad)
    return (jnp.array(ids_out, jnp.int32),
            jnp.array(seg_out, jnp.int32),
            jnp.array(mask_out, jnp.int32))


if __name__ == "__main__":
    # Small shapes: cap_max_len=8, cap_num=2 -> L=16.
    cap_max_len, cap_num = 8, 2
    L = cap_max_len * cap_num

    # Case 1: two string captions through the toy tokenizer.
    captions = [
        "a dog runs across the green field chasing a ball",
        "two people sitting on a bench",
    ]
    token_ids, lengths = build_inputs(captions, L)

    ids, seg, mask = lxrt_encoder_caption_pack(token_ids, lengths)
    jax.block_until_ready((ids, seg, mask))

    ref_ids, ref_seg, ref_mask = reference_pack(token_ids, lengths, L)
    assert jnp.array_equal(ids, ref_ids)
    assert jnp.array_equal(seg, ref_seg)
    assert jnp.array_equal(mask, ref_mask)
    assert ids.shape == (2, L) and ids.dtype == jnp.int32

    # Case 2: deterministic random ids/lengths (PRNGKey(0)), exercising
    # truncation (lengths up to L > L-2) and empty captions.
    key = jax.random.PRNGKey(0)
    kt, kl = jax.random.split(key)
    B2 = 5
    rnd_tok = jax.random.randint(kt, (B2, L), 1000, 2000, dtype=jnp.int32)
    rnd_len = jax.random.randint(kl, (B2,), 0, L + 1, dtype=jnp.int32)
    lane = jnp.arange(L)[None, :]
    rnd_tok = jnp.where(lane < rnd_len[:, None], rnd_tok, 0)

    ids2, seg2, mask2 = lxrt_encoder_caption_pack(rnd_tok, rnd_len)
    jax.block_until_ready((ids2, seg2, mask2))
    r_ids2, r_seg2, r_mask2 = reference_pack(rnd_tok, rnd_len, L)
    assert jnp.array_equal(ids2, r_ids2)
    assert jnp.array_equal(seg2, r_seg2)
    assert jnp.array_equal(mask2, r_mask2)

    print("KERNEL_OK")
</pallas_src>

<mosaic_0001>
module attributes {stable_mosaic.version = 11 : i64} {
  func.func @caption_pack_kernel(%arg0: i32, %arg1: memref<1x128xi32, #tpu.memory_space<vmem>>, %arg2: memref<1x128xi32, #tpu.memory_space<vmem>>, %arg3: memref<1x128xi32, #tpu.memory_space<vmem>>, %arg4: memref<1x128xi32, #tpu.memory_space<vmem>>) attributes {dimension_semantics = [#tpu.dimension_semantics<parallel>], iteration_bounds = array<i64: 1>, scalar_prefetch = 0 : i64, scratch_operands = 0 : i64, tpu.core_type = #tpu.core_type<tc>, window_params = [{transform_indices = @transform_0, window_bounds = array<i64: 1, 128>}, {transform_indices = @transform_1, window_bounds = array<i64: 1, 128>}, {transform_indices = @transform_2, window_bounds = array<i64: 1, 128>}, {transform_indices = @transform_3, window_bounds = array<i64: 1, 128>}]} {
    %0 = tpu.iota {dimensions = array<i32: 1>} : vector<1x128xi32>
    %c15_i32 = arith.constant 15 : i32
    %1 = vector.broadcast %c15_i32 : i32 to vector<1x128xi32>
    %2 = arith.andi %0, %1 : vector<1x128xi32>
    %c0 = arith.constant 0 : index
    %c0_0 = arith.constant 0 : index
    %3 = vector.load %arg2[%c0, %c0_0] : memref<1x128xi32, #tpu.memory_space<vmem>>, vector<1x128xi32>
    %c0_1 = arith.constant 0 : index
    %c0_2 = arith.constant 0 : index
    %4 = vector.load %arg1[%c0_1, %c0_2] : memref<1x128xi32, #tpu.memory_space<vmem>>, vector<1x128xi32>
    %c1_i32 = arith.constant 1 : i32
    %5 = tpu.dynamic_rotate %4 by %c1_i32 dim 1 : vector<1x128xi32>, i32 -> vector<1x128xi32>
    %c0_i32 = arith.constant 0 : i32
    %6 = vector.broadcast %c0_i32 : i32 to vector<1x128xi32>
    %7 = arith.cmpi eq, %2, %6 : vector<1x128xi32>
    %c1_i32_3 = arith.constant 1 : i32
    %8 = vector.broadcast %c1_i32_3 : i32 to vector<1x128xi32>
    %9 = arith.cmpi sge, %2, %8 : vector<1x128xi32>
    %10 = arith.cmpi sle, %2, %3 : vector<1x128xi32>
    %11 = arith.andi %9, %10 : vector<1x128xi1>
    %c1_i32_4 = arith.constant 1 : i32
    %12 = vector.broadcast %c1_i32_4 : i32 to vector<1x128xi32>
    %13 = arith.addi %3, %12 : vector<1x128xi32>
    %14 = arith.cmpi eq, %2, %13 : vector<1x128xi32>
    %c0_i32_5 = arith.constant 0 : i32
    %15 = vector.broadcast %c0_i32_5 : i32 to vector<1x128xi32>
    %16 = arith.select %11, %5, %15 : vector<1x128xi1>, vector<1x128xi32>
    %17 = arith.extui %7 : vector<1x128xi1> to vector<1x128xi32>
    %c101_i32 = arith.constant 101 : i32
    %18 = vector.broadcast %c101_i32 : i32 to vector<1x128xi32>
    %19 = arith.muli %17, %18 : vector<1x128xi32>
    %20 = arith.addi %16, %19 : vector<1x128xi32>
    %21 = arith.extui %14 : vector<1x128xi1> to vector<1x128xi32>
    %c102_i32 = arith.constant 102 : i32
    %22 = vector.broadcast %c102_i32 : i32 to vector<1x128xi32>
    %23 = arith.muli %21, %22 : vector<1x128xi32>
    %24 = arith.addi %20, %23 : vector<1x128xi32>
    %c0_6 = arith.constant 0 : index
    %c0_7 = arith.constant 0 : index
    %25 = vector.load %arg3[%c0_6, %c0_7] : memref<1x128xi32, #tpu.memory_space<vmem>>, vector<1x128xi32>
    tpu.vector_store %arg3[%c0_6, %c0_7], %24 {strides = array<i32>} : memref<1x128xi32, #tpu.memory_space<vmem>>, vector<1x128xi32>,
    %c2_i32 = arith.constant 2 : i32
    %26 = vector.broadcast %c2_i32 : i32 to vector<1x128xi32>
    %27 = arith.addi %3, %26 : vector<1x128xi32>
    %28 = arith.cmpi slt, %2, %27 : vector<1x128xi32>
    %29 = arith.extui %28 : vector<1x128xi1> to vector<1x128xi32>
    %c0_8 = arith.constant 0 : index
    %c0_9 = arith.constant 0 : index
    %30 = vector.load %arg4[%c0_8, %c0_9] : memref<1x128xi32, #tpu.memory_space<vmem>>, vector<1x128xi32>
    tpu.vector_store %arg4[%c0_8, %c0_9], %29 {strides = array<i32>} : memref<1x128xi32, #tpu.memory_space<vmem>>, vector<1x128xi32>,
    return
  }
  func.func @transform_0(%arg0: i32) -> (i32, i32) {
    %c0_i32 = arith.constant 0 : i32
    %c0_i32_0 = arith.constant 0 : i32
    return %arg0, %c0_i32 : i32, i32
  }
  func.func @transform_1(%arg0: i32) -> (i32, i32) {
    %c0_i32 = arith.constant 0 : i32
    %c0_i32_0 = arith.constant 0 : i32
    return %arg0, %c0_i32 : i32, i32
  }
  func.func @transform_2(%arg0: i32) -> (i32, i32) {
    %c0_i32 = arith.constant 0 : i32
    %c0_i32_0 = arith.constant 0 : i32
    return %arg0, %c0_i32 : i32, i32
  }
  func.func @transform_3(%arg0: i32) -> (i32, i32) {
    %c0_i32 = arith.constant 0 : i32
    %c0_i32_0 = arith.constant 0 : i32
    return %arg0, %c0_i32 : i32, i32
  }
}

</mosaic_0001>

<bundles_post_ra>
// kernel: tpu_custom_call.1
= control target key start
LH: loop header
LB: loop body
LE: loop exit
PB: predicated region body
PF: predicated region fallthrough
CT: control target
= control target key end

     0   :  { %9 = vsyncpa [#allocation3], 0  ;;  %s195_s0 = inlined_call_operand.hbm [shape: s32[1,128], index: 0, kind: input, shape index: {}]   ;;  %s196_s1 = inlined_call_operand.vmem [shape: s32[1,128], index: 1, kind: input, shape index: {}]   ;;  %s197_s2 = inlined_call_operand.hbm [shape: s32[1,128], index: 2, kind: output, shape index: {0}]   ;;  %s198_s3 = inlined_call_operand.hbm [shape: s32[1,128], index: 3, kind: output, shape index: {1}]  }
   0x1   :  { %10 = vsyncpa [#allocation4], 0 }
   0x2   :  { %11 = vsyncpa [#allocation7], 0  ;;  %s152_s12 = smov [#allocation2]  }
   0x3   :  { %s18_s13 = sshll.u32 %s152_s12, 4  ;;  %s19_s13 = int_to_ptr.vmem [resolvable:$true] %s18_s13 }
   0x4   :  { %s94_s14 = scalar_lea.vmem %s19_s13, 16  ;;  %s98_s15 = scalar_lea.vmem %s19_s13, 32 }
   0x5   :  { %p95_p0 = scmp.ne.s32.totalorder %s19_s13, %s94_s14  ;;  %p99_p1 = scmp.lt.s32.totalorder %s19_s13, %s19_s13 }
   0x6   :  { %p100_p2 = scmp.lt.s32.totalorder %s98_s15, %s94_s14 }
   0x8   :  { %p101_p3 = por %p100_p2, %p99_p1 }
   0xa   :  { %p102_p4 = pnand %p101_p3, %p95_p0 }
   0xc   :  { %105 = shalt.err (!%p102_p4)
}
   0xd   :  { %21 = dma.hbm_to_vmem [thread:$0]  %s195_s0, 16, %s19_s13, [#allocation3]  }
   0xe   :  { %146 = dma.done.wait [#allocation3], 16  }
   0xf   :  { %147 = vsyncadd [#allocation3], 4294967280  ;;  %v27_v0 = vlaneseq  ;;  %v31_v3 = vld [vmem:[#allocation2] sm:$0x1]  ;;  %v153_v5 = vmov 0   ;;  %s154_s20 = smov [#allocation6]  }
  0x10   :  { %v30_v4 = vld [vmem:[%s196_s1] sm:$0x1]  ;;  %s68_s21 = sshll.u32 %s154_s20, 4  ;;  %s155_s22 = smov 1   ;;  %s69_s21 = int_to_ptr.vmem [resolvable:$true] %s68_s21 }
  0x11   :  { %v28_v1 = vand.u32 127, %v27_v0  ;;  %32 = vrot.lane.b32.xlu0 %v31_v3, %s155_s22  ;;  %v38_v7 = vadd.s32 1, %v30_v4  ;;  %v48_v8 = vadd.s32 2, %v30_v4  ;;  %s106_s0 = scalar_lea.vmem %s69_s21, 16  ;;  %s110_s1 = scalar_lea.vmem %s69_s21, 32 }
  0x12   :  { %p107_p5 = scmp.ne.s32.totalorder %s69_s21, %s106_s0  ;;  %p111_p6 = scmp.lt.s32.totalorder %s69_s21, %s69_s21 }
  0x13   :  { %v29_v2 = vand.u32 15, %v28_v1  ;;  %p112_p7 = scmp.lt.s32.totalorder %s110_s1, %s106_s0 }
  0x15   :  { %vm34_vm0 = vcmp.eq.s32.totalorder %v29_v2, 0  ;;  %vm35_vm1 = vcmp.ge.s32.totalorder %v29_v2, 1  ;;  %vm36_vm2 = vcmp.le.s32.totalorder %v29_v2, %v30_v4  ;;  %vm39_vm4 = vcmp.eq.s32.totalorder %v29_v2, %v38_v7  ;;  %p113_p8 = por %p112_p7, %p111_p6 }
  0x16   :  { %v41_v6 = vsel %vm34_vm0, 1, %v153_v5  ;;  %vm183_vm3 = vmand %vm35_vm1, %vm36_vm2  ;;  %vm49_vm5 = vcmp.lt.s32.totalorder %v29_v2, %v48_v8  ;;  %v44_v10 = vsel %vm39_vm4, 1, %v153_v5 }
  0x17   :  { %v50_v11 = vsel %vm49_vm5, 1, %v153_v5  ;;  %p114_p9 = pnand %p113_p8, %p107_p5 }
  0x18   :  { %51 = vst [vmem:[#allocation6] sm:$0x1] %v50_v11 }
  0x19   :  { %117 = shalt.err (!%p114_p9)
}
  0x1a   :  { %71 = dma.vmem_to_hbm [thread:$0]  %s69_s21, 16, %s198_s3, [#allocation7]   ;;  %v42_v12 = vmul.u32 101, %v41_v6  ;;  %v45_v14 = vmul.u32 102, %v44_v10 }
  0x1b   :  { %s156_s25 = smov [#allocation5]  }
  0x1c   :  { %s58_s26 = sshll.u32 %s156_s25, 4  ;;  %s59_s26 = int_to_ptr.vmem [resolvable:$true] %s58_s26 }
  0x1d   :  { %s126_s27 = scalar_lea.vmem %s59_s26, 16  ;;  %s130_s28 = scalar_lea.vmem %s59_s26, 32 }
  0x1e   :  { %p127_p10 = scmp.ne.s32.totalorder %s59_s26, %s126_s27  ;;  %p131_p11 = scmp.lt.s32.totalorder %s59_s26, %s59_s26 }
  0x1f   :  { %p132_p12 = scmp.lt.s32.totalorder %s130_s28, %s126_s27 }
  0x21   :  { %p133_p13 = por %p132_p12, %p131_p11 }
  0x23   :  { %p134_p0 = pnand %p133_p13, %p127_p10 }
  0x83   :  { %v33_v13 = vpop.permute.xlu0 %32 }
  0x84   :  { %v40_v15 = vsel %vm183_vm3, %v33_v13, 0 }
  0x85   :  { %v43_v16 = vadd.s32 %v42_v12, %v40_v15 }
  0x87   :  { %v46_v17 = vadd.s32 %v45_v14, %v43_v16 }
  0x89   :  { %47 = vst [vmem:[#allocation5] sm:$0x1] %v46_v17 }
  0x8a   :  { %137 = shalt.err (!%p134_p0)
}
  0x8b   :  { %61 = dma.vmem_to_hbm [thread:$0]  %s59_s26, 16, %s197_s2, [#allocation4]  }
  0x8c   :  { %148 = dma.done.wait [#allocation4], 16  }
  0x8d   :  { %149 = vsyncadd [#allocation4], 4294967280 }
  0x8e   :  { %150 = dma.done.wait [#allocation7], 16  }
  0x8f   :  { %151 = vsyncadd [#allocation7], 4294967280 }
  0x90   :  { %78 = vsyncpa [#allocation3], 1 }
  0x91   :  { %79 = vsyncpa [#allocation4], 1 }
  0x92   :  { %80 = vsyncpa [#allocation7], 1 }

</bundles_post_ra>
